<compile_context>
chip_gen: v6e
topology: v6e:2x2x1
jax: 0.10.0
libtpu: 0.0.40
codegen_flags: <defaults>
</compile_context>

<pallas_src>
import functools
import math

import jax
import jax.numpy as jnp
from jax.experimental import pallas as pl
from jax.experimental.pallas import tpu as pltpu


# ----------------------------- in-kernel helpers -----------------------------

def _new_gelu(x):
    c = math.sqrt(2.0 / math.pi)
    x3 = x * x * x                      # NOT jnp.power(x, 3.0): avoids EUP pow chain
    return 0.5 * x * (1.0 + jnp.tanh(c * (x + 0.044715 * x3)))


def _layer_norm(x, gamma, beta, eps=1e-5):
    # x: (M, C); gamma/beta: (1, C); all f32
    mean = jnp.mean(x, axis=-1, keepdims=True)
    var = jnp.mean(jnp.square(x - mean), axis=-1, keepdims=True)
    return (x - mean) * jax.lax.rsqrt(var + eps) * gamma + beta


# --------------------------------- kernel ------------------------------------

def block_kernel(
    n_head,                              # bound via functools.partial (static)
    x_ref,                               # (Bt, T, C)
    mask_ref,                            # (T, T) additive causal mask, f32 (0 / -1e30)
    ln1_g_ref, ln1_b_ref,                # (1, C)
    w_qkv_ref, b_qkv_ref,                # (C, 3C), (1, 3C)   (Q columns pre-scaled by 1/sqrt(hd))
    w_proj_ref, b_proj_ref,              # (C, C), (1, C)
    ln2_g_ref, ln2_b_ref,                # (1, C)
    w_fc_ref, b_fc_ref,                  # (C, 4C), (1, 4C)
    w_fc2_ref, b_fc2_ref,                # (4C, C), (1, C)
    out_ref,                             # (Bt, T, C)
    y_scratch,                           # VMEM (Bt*T, C) f32 — per-head contexts land here
):
    Bt, T, C = x_ref.shape
    hd = C // n_head
    M = Bt * T
    cdt = w_qkv_ref.dtype                # MXU operand dtype (f32 or bf16); accumulation is f32

    x = x_ref[...].astype(jnp.float32).reshape(M, C)

    # ---- LayerNorm 1 (f32) ----
    h = _layer_norm(x, ln1_g_ref[...], ln1_b_ref[...]).astype(cdt)

    # ---- fused QKV projection: one lane-dense (M,C)@(C,3C) matmul, f32 accumulation ----
    qkv = jnp.dot(h, w_qkv_ref[...], preferred_element_type=jnp.float32) + b_qkv_ref[...]

    # Grid-invariant additive causal mask (resident input). Must stay f32: -1e30 overflows bf16.
    neg_mask = mask_ref[...]

    # ---- causal self-attention, per head ----
    # n_head is small & static -> unrolled loop with static lane slices of the fused qkv.
    # Each head's context is stored at its column offset in y_scratch so the output projection
    # below is one full-depth (M,C)@(C,C) matmul.
    # TODO(synk): for n_head >= 8, switch to lax.fori_loop over a qkv VMEM scratch to bound
    # vreg live ranges (static unroll does not).
    for hh in range(n_head):
        lo = hh * hd
        q = qkv[:, lo:lo + hd].reshape(Bt, T, hd).astype(cdt)
        k = qkv[:, C + lo:C + lo + hd].reshape(Bt, T, hd).astype(cdt)
        v = qkv[:, 2 * C + lo:2 * C + lo + hd].reshape(Bt, T, hd).astype(cdt)

        # scores (softmax scale already folded into the Q projection); f32 accumulation
        s = jnp.einsum("bqd,bkd->bqk", q, k,
                       preferred_element_type=jnp.float32) + neg_mask[None]   # (Bt, T, T)
        s = s - jnp.max(s, axis=-1, keepdims=True)
        p = jnp.exp(s)
        # approx reciprocal -> EUP slot (free vs. VPU divide); probabilities sum to 1 only
        # approximately — fine for inference, f32 path validated to <1e-3 below.
        p = p * pl.reciprocal(jnp.sum(p, axis=-1, keepdims=True), approx=True)

        pv = jnp.einsum("bqk,bkd->bqd", p.astype(cdt), v,
                        preferred_element_type=jnp.float32)                   # (Bt, T, hd)
        y_scratch[:, lo:lo + hd] = pv.reshape(M, hd)

    # ---- attention output projection: single lane-/depth-dense (M,C)@(C,C) matmul ----
    y = jnp.dot(y_scratch[...].astype(cdt), w_proj_ref[...],
                preferred_element_type=jnp.float32) + b_proj_ref[...]
    x1 = x + y

    # ---- LayerNorm 2 + MLP (NewGELU) + residual ----
    h2 = _layer_norm(x1, ln2_g_ref[...], ln2_b_ref[...]).astype(cdt)
    ff = jnp.dot(h2, w_fc_ref[...], preferred_element_type=jnp.float32) + b_fc_ref[...]
    ff = _new_gelu(ff)
    ff = jnp.dot(ff.astype(cdt), w_fc2_ref[...],
                 preferred_element_type=jnp.float32) + b_fc2_ref[...]

    out_ref[...] = (x1 + ff).reshape(Bt, T, C).astype(out_ref.dtype)


# --------------------------------- wrapper -----------------------------------

def _vmem_limit_bytes():
    """100 MiB on 128-MiB chips (v5e/v6e); capacity-8MiB (=56 MiB) on 64-MiB v7x."""
    try:
        cap = int(pltpu.get_tpu_info().vmem_capacity_bytes)
    except Exception:
        cap = 64 << 20
    return int(min(cap - (8 << 20), 100 << 20))


def _pick_block_b(B, T, max_m=512):
    """Largest Bt dividing B with M=Bt*T <= max_m while keeping the grid >= 2 steps
    (so v7x's two TensorCores both get work through the parallel axis)."""
    bt = 1
    for cand in range(2, B + 1):
        if B % cand:
            continue
        if cand * T > max_m:
            break
        if B // cand < 2:
            break
        bt = cand
    return bt


def _prepare_inputs(x, params, n_head, matmul_dtype):
    """Host-side (free) weight prep: scale folding, mask construction, dtype cast."""
    B, T, C = x.shape
    assert C % n_head == 0
    hd = C // n_head
    f32 = jnp.float32
    cdt = matmul_dtype or jnp.float32

    # Additive causal mask: 0 where allowed, -1e30 where masked.  Keep f32.
    idx = jnp.arange(T)
    neg_mask = jnp.where(idx[None, :] <= idx[:, None], 0.0, -1e30).astype(f32)

    # Fold the 1/sqrt(hd) softmax scale into the Q columns of the fused qkv projection.
    scale = 1.0 / math.sqrt(hd)
    col_scale = jnp.concatenate([jnp.full((C,), scale, f32), jnp.ones((2 * C,), f32)])
    w_qkv = (params["w_attn"].astype(f32) * col_scale[None, :]).astype(cdt)
    b_qkv = (params["b_attn"].astype(f32).reshape(1, 3 * C) * col_scale[None, :]).astype(f32)

    return (
        x, neg_mask,
        params["ln1_g"].astype(f32), params["ln1_b"].astype(f32),
        w_qkv, b_qkv,
        params["w_proj"].astype(cdt), params["b_proj"].astype(f32),
        params["ln2_g"].astype(f32), params["ln2_b"].astype(f32),
        params["w_fc"].astype(cdt), params["b_fc"].astype(f32),
        params["w_fc_proj"].astype(cdt), params["b_fc_proj"].astype(f32),
    )


def transformer_block(x, params, n_head, *, matmul_dtype=None, block_b=None):
    """matmul_dtype=jnp.bfloat16 casts MXU operands (weights + activations) to bf16 with f32
    accumulation; LayerNorm / softmax / mask math stays f32.  On v5e (no bf16 VPU/EUP) measure
    before enabling — the win there is DMA/VMEM, not compute."""
    B, T, C = x.shape
    Bt = block_b or _pick_block_b(B, T)
    assert B % Bt == 0, "block_b must divide batch"
    M = Bt * T

    args = _prepare_inputs(x, params, n_head, matmul_dtype)

    def const_spec(shape):
        # Grid-invariant inputs: same block index every step -> DMA'd once, stays resident.
        zeros = (0,) * len(shape)
        return pl.BlockSpec(shape, lambda b, z=zeros: z)

    in_specs = [
        pl.BlockSpec((Bt, T, C), lambda b: (b, 0, 0)),        # x (pipelined over batch)
        const_spec((T, T)),                                   # additive causal mask
        const_spec((1, C)), const_spec((1, C)),               # ln1 gamma / beta
        const_spec((C, 3 * C)), const_spec((1, 3 * C)),       # fused qkv
        const_spec((C, C)), const_spec((1, C)),               # attn out proj
        const_spec((1, C)), const_spec((1, C)),               # ln2 gamma / beta
        const_spec((C, 4 * C)), const_spec((1, 4 * C)),       # mlp fc
        const_spec((4 * C, C)), const_spec((1, C)),           # mlp proj
    ]

    grid_spec = pltpu.PrefetchScalarGridSpec(
        num_scalar_prefetch=0,
        grid=(B // Bt,),
        in_specs=in_specs,
        out_specs=pl.BlockSpec((Bt, T, C), lambda b: (b, 0, 0)),
        scratch_shapes=[pltpu.VMEM((M, C), jnp.float32)],     # per-head context scratch
    )

    return pl.pallas_call(
        functools.partial(block_kernel, n_head),
        out_shape=jax.ShapeDtypeStruct((B, T, C), x.dtype),
        grid_spec=grid_spec,
        compiler_params=pltpu.CompilerParams(
            dimension_semantics=("parallel",),
            vmem_limit_bytes=_vmem_limit_bytes(),
        ),
    )(*args)


# ------------------------------ pure-JAX reference ----------------------------

def reference_block(x, params, n_head):
    """Pure-JAX reference mirroring the PyTorch forward (dropout = identity)."""
    B, T, C = x.shape
    hd = C // n_head

    def ln(v, g, b, eps=1e-5):
        m = jnp.mean(v, axis=-1, keepdims=True)
        var = jnp.mean(jnp.square(v - m), axis=-1, keepdims=True)
        return (v - m) * jax.lax.rsqrt(var + eps) * g + b

    h = ln(x, params["ln1_g"], params["ln1_b"])
    qkv = h @ params["w_attn"] + params["b_attn"]
    q, k, v = jnp.split(qkv, 3, axis=-1)
    q = q.reshape(B, T, n_head, hd).transpose(0, 2, 1, 3)
    k = k.reshape(B, T, n_head, hd).transpose(0, 2, 1, 3)
    v = v.reshape(B, T, n_head, hd).transpose(0, 2, 1, 3)
    att = jnp.einsum("bhtd,bhsd->bhts", q, k) / math.sqrt(hd)
    mask = jnp.tril(jnp.ones((T, T), dtype=bool))
    att = jnp.where(mask[None, None], att, -jnp.inf)
    att = jax.nn.softmax(att, axis=-1)
    y = jnp.einsum("bhts,bhsd->bhtd", att, v)
    y = y.transpose(0, 2, 1, 3).reshape(B, T, C)
    y = y @ params["w_proj"] + params["b_proj"]
    x1 = x + y
    h2 = ln(x1, params["ln2_g"], params["ln2_b"])
    ff = h2 @ params["w_fc"] + params["b_fc"]
    ff = 0.5 * ff * (1.0 + jnp.tanh(math.sqrt(2.0 / math.pi) * (ff + 0.044715 * ff ** 3)))
    ff = ff @ params["w_fc_proj"] + params["b_fc_proj"]
    return x1 + ff


def init_params(key, n_embd):
    C = n_embd
    ks = jax.random.split(key, 8)
    s = 0.02
    return {
        "ln1_g": jnp.ones((1, C), jnp.float32),
        "ln1_b": jnp.zeros((1, C), jnp.float32),
        "w_attn": s * jax.random.normal(ks[0], (C, 3 * C), jnp.float32),
        "b_attn": s * jax.random.normal(ks[1], (1, 3 * C), jnp.float32),
        "w_proj": s * jax.random.normal(ks[2], (C, C), jnp.float32),
        "b_proj": s * jax.random.normal(ks[3], (1, C), jnp.float32),
        "ln2_g": jnp.ones((1, C), jnp.float32),
        "ln2_b": jnp.zeros((1, C), jnp.float32),
        "w_fc": s * jax.random.normal(ks[4], (C, 4 * C), jnp.float32),
        "b_fc": s * jax.random.normal(ks[5], (1, 4 * C), jnp.float32),
        "w_fc_proj": s * jax.random.normal(ks[6], (4 * C, C), jnp.float32),
        "b_fc_proj": s * jax.random.normal(ks[7], (1, C), jnp.float32),
    }


if __name__ == "__main__":
    B, T, C, n_head = 2, 8, 32, 4

    key = jax.random.PRNGKey(0)
    kx, kp = jax.random.split(key)
    x = jax.random.normal(kx, (B, T, C), jnp.float32)
    params = init_params(kp, C)

    ref = reference_block(x, params, n_head)

    # f32 matmul path (tight check)
    out = jax.block_until_ready(transformer_block(x, params, n_head))
    assert out.shape == (B, T, C)
    err = float(jnp.max(jnp.abs(out - ref)))
    assert err < 1e-3, f"f32 path max abs err {err}"

    # bf16 MXU operands with f32 accumulation (looser check)
    out_bf16 = jax.block_until_ready(
        transformer_block(x, params, n_head, matmul_dtype=jnp.bfloat16))
    err_bf16 = float(jnp.max(jnp.abs(out_bf16 - ref)))
    assert err_bf16 < 5e-2, f"bf16 path max abs err {err_bf16}"

    print("KERNEL_OK")
</pallas_src>

<mosaic_0001>
module attributes {stable_mosaic.version = 11 : i64} {
  func.func @block_kernel(%arg0: i32, %arg1: memref<1x8x32xf32, #tpu.memory_space<vmem>>, %arg2: memref<8x8xf32, #tpu.memory_space<vmem>>, %arg3: memref<1x32xf32, #tpu.memory_space<vmem>>, %arg4: memref<1x32xf32, #tpu.memory_space<vmem>>, %arg5: memref<32x96xf32, #tpu.memory_space<vmem>>, %arg6: memref<1x96xf32, #tpu.memory_space<vmem>>, %arg7: memref<32x32xf32, #tpu.memory_space<vmem>>, %arg8: memref<1x32xf32, #tpu.memory_space<vmem>>, %arg9: memref<1x32xf32, #tpu.memory_space<vmem>>, %arg10: memref<1x32xf32, #tpu.memory_space<vmem>>, %arg11: memref<32x128xf32, #tpu.memory_space<vmem>>, %arg12: memref<1x128xf32, #tpu.memory_space<vmem>>, %arg13: memref<128x32xf32, #tpu.memory_space<vmem>>, %arg14: memref<1x32xf32, #tpu.memory_space<vmem>>, %arg15: memref<1x8x32xf32, #tpu.memory_space<vmem>>, %arg16: memref<8x32xf32, #tpu.memory_space<vmem>>) attributes {dimension_semantics = [#tpu.dimension_semantics<parallel>], iteration_bounds = array<i64: 2>, scalar_prefetch = 0 : i64, scratch_operands = 1 : i64, tpu.core_type = #tpu.core_type<tc>, window_params = [{transform_indices = @transform_0, window_bounds = array<i64: 1, 8, 32>}, {pipeline_mode = #tpu.pipeline_mode<synchronous>, transform_indices = @transform_1, window_bounds = array<i64: 8, 8>}, {pipeline_mode = #tpu.pipeline_mode<synchronous>, transform_indices = @transform_2, window_bounds = array<i64: 1, 32>}, {pipeline_mode = #tpu.pipeline_mode<synchronous>, transform_indices = @transform_3, window_bounds = array<i64: 1, 32>}, {pipeline_mode = #tpu.pipeline_mode<synchronous>, transform_indices = @transform_4, window_bounds = array<i64: 32, 96>}, {pipeline_mode = #tpu.pipeline_mode<synchronous>, transform_indices = @transform_5, window_bounds = array<i64: 1, 96>}, {pipeline_mode = #tpu.pipeline_mode<synchronous>, transform_indices = @transform_6, window_bounds = array<i64: 32, 32>}, {pipeline_mode = #tpu.pipeline_mode<synchronous>, transform_indices = @transform_7, window_bounds = array<i64: 1, 32>}, {pipeline_mode = #tpu.pipeline_mode<synchronous>, transform_indices = @transform_8, window_bounds = array<i64: 1, 32>}, {pipeline_mode = #tpu.pipeline_mode<synchronous>, transform_indices = @transform_9, window_bounds = array<i64: 1, 32>}, {pipeline_mode = #tpu.pipeline_mode<synchronous>, transform_indices = @transform_10, window_bounds = array<i64: 32, 128>}, {pipeline_mode = #tpu.pipeline_mode<synchronous>, transform_indices = @transform_11, window_bounds = array<i64: 1, 128>}, {pipeline_mode = #tpu.pipeline_mode<synchronous>, transform_indices = @transform_12, window_bounds = array<i64: 128, 32>}, {pipeline_mode = #tpu.pipeline_mode<synchronous>, transform_indices = @transform_13, window_bounds = array<i64: 1, 32>}, {transform_indices = @transform_14, window_bounds = array<i64: 1, 8, 32>}]} {
    %c0 = arith.constant 0 : index
    %c0_0 = arith.constant 0 : index
    %c0_1 = arith.constant 0 : index
    %0 = vector.load %arg1[%c0, %c0_0, %c0_1] : memref<1x8x32xf32, #tpu.memory_space<vmem>>, vector<1x8x32xf32>
    %1 = vector.shape_cast %0 : vector<1x8x32xf32> to vector<8x32xf32>
    %c0_2 = arith.constant 0 : index
    %c0_3 = arith.constant 0 : index
    %2 = vector.load %arg3[%c0_2, %c0_3] : memref<1x32xf32, #tpu.memory_space<vmem>>, vector<1x32xf32>
    %c0_4 = arith.constant 0 : index
    %c0_5 = arith.constant 0 : index
    %3 = vector.load %arg4[%c0_4, %c0_5] : memref<1x32xf32, #tpu.memory_space<vmem>>, vector<1x32xf32>
    %cst = arith.constant dense<0.000000e+00> : vector<8xf32>
    %4 = vector.multi_reduction <add>, %1, %cst [1] : vector<8x32xf32> to vector<8xf32>
    %5 = vector.shape_cast %4 : vector<8xf32> to vector<8x1xf32>
    %cst_6 = arith.constant 3.200000e+01 : f32
    %6 = vector.broadcast %cst_6 : f32 to vector<8x1xf32>
    %7 = arith.divf %5, %6 : vector<8x1xf32>
    %8 = vector.broadcast %7 : vector<8x1xf32> to vector<8x32xf32>
    %9 = arith.subf %1, %8 : vector<8x32xf32>
    %10 = arith.mulf %9, %9 : vector<8x32xf32>
    %cst_7 = arith.constant dense<0.000000e+00> : vector<8xf32>
    %11 = vector.multi_reduction <add>, %10, %cst_7 [1] : vector<8x32xf32> to vector<8xf32>
    %12 = vector.shape_cast %11 : vector<8xf32> to vector<8x1xf32>
    %cst_8 = arith.constant 3.200000e+01 : f32
    %13 = vector.broadcast %cst_8 : f32 to vector<8x1xf32>
    %14 = arith.divf %12, %13 : vector<8x1xf32>
    %15 = vector.broadcast %7 : vector<8x1xf32> to vector<8x32xf32>
    %16 = arith.subf %1, %15 : vector<8x32xf32>
    %cst_9 = arith.constant 9.99999974E-6 : f32
    %17 = vector.broadcast %cst_9 : f32 to vector<8x1xf32>
    %18 = arith.addf %14, %17 : vector<8x1xf32>
    %19 = math.rsqrt %18 : vector<8x1xf32>
    %20 = vector.broadcast %19 : vector<8x1xf32> to vector<8x32xf32>
    %21 = arith.mulf %16, %20 : vector<8x32xf32>
    %22 = vector.broadcast %2 : vector<1x32xf32> to vector<8x32xf32>
    %23 = arith.mulf %21, %22 : vector<8x32xf32>
    %24 = vector.broadcast %3 : vector<1x32xf32> to vector<8x32xf32>
    %25 = arith.addf %23, %24 : vector<8x32xf32>
    %c0_10 = arith.constant 0 : index
    %c0_11 = arith.constant 0 : index
    %26 = vector.load %arg5[%c0_10, %c0_11] : memref<32x96xf32, #tpu.memory_space<vmem>>, vector<32x96xf32>
    %cst_12 = arith.constant dense<0.000000e+00> : vector<8x96xf32>
    %27 = tpu.matmul %25, %26, %cst_12 {dimension_numbers = #tpu.dot_dimension_numbers<[1], [0], [0], [1], [0, 0, 1, 1], [], []>} : vector<8x32xf32>, vector<32x96xf32>, vector<8x96xf32> -> vector<8x96xf32>
    %c0_13 = arith.constant 0 : index
    %c0_14 = arith.constant 0 : index
    %28 = vector.load %arg6[%c0_13, %c0_14] : memref<1x96xf32, #tpu.memory_space<vmem>>, vector<1x96xf32>
    %29 = vector.broadcast %28 : vector<1x96xf32> to vector<8x96xf32>
    %30 = arith.addf %27, %29 : vector<8x96xf32>
    %c0_15 = arith.constant 0 : index
    %c0_16 = arith.constant 0 : index
    %31 = vector.load %arg2[%c0_15, %c0_16] : memref<8x8xf32, #tpu.memory_space<vmem>>, vector<8x8xf32>
    %32 = vector.extract_strided_slice %30 {offsets = [0, 0], sizes = [8, 8], strides = [1, 1]} : vector<8x96xf32> to vector<8x8xf32>
    %33 = vector.shape_cast %32 : vector<8x8xf32> to vector<1x8x8xf32>
    %34 = vector.extract_strided_slice %30 {offsets = [0, 32], sizes = [8, 8], strides = [1, 1]} : vector<8x96xf32> to vector<8x8xf32>
    %35 = vector.shape_cast %34 : vector<8x8xf32> to vector<1x8x8xf32>
    %36 = vector.extract_strided_slice %30 {offsets = [0, 64], sizes = [8, 8], strides = [1, 1]} : vector<8x96xf32> to vector<8x8xf32>
    %37 = vector.shape_cast %36 : vector<8x8xf32> to vector<1x8x8xf32>
    "tpu.trace_start"() <{level = 10 : i32, message = "bqd,bkd->bqk"}> : () -> ()
    %cst_17 = arith.constant dense<0.000000e+00> : vector<1x8x8xf32>
    %38 = tpu.matmul %33, %35, %cst_17 {dimension_numbers = #tpu.dot_dimension_numbers<[2], [2], [1], [1], [0, 0, 0, 1, 1, 1], [0], [0]>} : vector<1x8x8xf32>, vector<1x8x8xf32>, vector<1x8x8xf32> -> vector<1x8x8xf32>
    "tpu.trace_stop"() : () -> ()
    %39 = vector.shape_cast %31 : vector<8x8xf32> to vector<1x8x8xf32>
    %40 = arith.addf %38, %39 : vector<1x8x8xf32>
    %cst_18 = arith.constant dense<0xFF800000> : vector<1x8xf32>
    %41 = vector.multi_reduction <maximumf>, %40, %cst_18 [2] : vector<1x8x8xf32> to vector<1x8xf32>
    %42 = vector.shape_cast %41 : vector<1x8xf32> to vector<1x8x1xf32>
    %43 = vector.broadcast %42 : vector<1x8x1xf32> to vector<1x8x8xf32>
    %44 = arith.subf %40, %43 : vector<1x8x8xf32>
    %45 = math.exp %44 : vector<1x8x8xf32>
    %cst_19 = arith.constant dense<0.000000e+00> : vector<1x8xf32>
    %46 = vector.multi_reduction <add>, %45, %cst_19 [2] : vector<1x8x8xf32> to vector<1x8xf32>
    %47 = vector.shape_cast %46 : vector<1x8xf32> to vector<1x8x1xf32>
    %48 = tpu.reciprocal %47 {approx = true} : vector<1x8x1xf32> -> vector<1x8x1xf32>
    %49 = vector.broadcast %48 : vector<1x8x1xf32> to vector<1x8x8xf32>
    %50 = arith.mulf %45, %49 : vector<1x8x8xf32>
    "tpu.trace_start"() <{level = 10 : i32, message = "bqk,bkd->bqd"}> : () -> ()
    %cst_20 = arith.constant dense<0.000000e+00> : vector<1x8x8xf32>
    %51 = tpu.matmul %50, %37, %cst_20 {dimension_numbers = #tpu.dot_dimension_numbers<[2], [1], [1], [2], [0, 0, 0, 1, 1, 2], [0], [0]>} : vector<1x8x8xf32>, vector<1x8x8xf32>, vector<1x8x8xf32> -> vector<1x8x8xf32>
    "tpu.trace_stop"() : () -> ()
    %52 = vector.shape_cast %51 : vector<1x8x8xf32> to vector<8x8xf32>
    %c0_21 = arith.constant 0 : index
    %c0_22 = arith.constant 0 : index
    %53 = vector.load %arg16[%c0_21, %c0_22] : memref<8x32xf32, #tpu.memory_space<vmem>>, vector<8x8xf32>
    tpu.vector_store %arg16[%c0_21, %c0_22], %52 {strides = array<i32>} : memref<8x32xf32, #tpu.memory_space<vmem>>, vector<8x8xf32>,
    %54 = vector.extract_strided_slice %30 {offsets = [0, 8], sizes = [8, 8], strides = [1, 1]} : vector<8x96xf32> to vector<8x8xf32>
    %55 = vector.shape_cast %54 : vector<8x8xf32> to vector<1x8x8xf32>
    %56 = vector.extract_strided_slice %30 {offsets = [0, 40], sizes = [8, 8], strides = [1, 1]} : vector<8x96xf32> to vector<8x8xf32>
    %57 = vector.shape_cast %56 : vector<8x8xf32> to vector<1x8x8xf32>
    %58 = vector.extract_strided_slice %30 {offsets = [0, 72], sizes = [8, 8], strides = [1, 1]} : vector<8x96xf32> to vector<8x8xf32>
    %59 = vector.shape_cast %58 : vector<8x8xf32> to vector<1x8x8xf32>
    "tpu.trace_start"() <{level = 10 : i32, message = "bqd,bkd->bqk"}> : () -> ()
    %cst_23 = arith.constant dense<0.000000e+00> : vector<1x8x8xf32>
    %60 = tpu.matmul %55, %57, %cst_23 {dimension_numbers = #tpu.dot_dimension_numbers<[2], [2], [1], [1], [0, 0, 0, 1, 1, 1], [0], [0]>} : vector<1x8x8xf32>, vector<1x8x8xf32>, vector<1x8x8xf32> -> vector<1x8x8xf32>
    "tpu.trace_stop"() : () -> ()
    %61 = vector.shape_cast %31 : vector<8x8xf32> to vector<1x8x8xf32>
    %62 = arith.addf %60, %61 : vector<1x8x8xf32>
    %cst_24 = arith.constant dense<0xFF800000> : vector<1x8xf32>
    %63 = vector.multi_reduction <maximumf>, %62, %cst_24 [2] : vector<1x8x8xf32> to vector<1x8xf32>
    %64 = vector.shape_cast %63 : vector<1x8xf32> to vector<1x8x1xf32>
    %65 = vector.broadcast %64 : vector<1x8x1xf32> to vector<1x8x8xf32>
    %66 = arith.subf %62, %65 : vector<1x8x8xf32>
    %67 = math.exp %66 : vector<1x8x8xf32>
    %cst_25 = arith.constant dense<0.000000e+00> : vector<1x8xf32>
    %68 = vector.multi_reduction <add>, %67, %cst_25 [2] : vector<1x8x8xf32> to vector<1x8xf32>
    %69 = vector.shape_cast %68 : vector<1x8xf32> to vector<1x8x1xf32>
    %70 = tpu.reciprocal %69 {approx = true} : vector<1x8x1xf32> -> vector<1x8x1xf32>
    %71 = vector.broadcast %70 : vector<1x8x1xf32> to vector<1x8x8xf32>
    %72 = arith.mulf %67, %71 : vector<1x8x8xf32>
    "tpu.trace_start"() <{level = 10 : i32, message = "bqk,bkd->bqd"}> : () -> ()
    %cst_26 = arith.constant dense<0.000000e+00> : vector<1x8x8xf32>
    %73 = tpu.matmul %72, %59, %cst_26 {dimension_numbers = #tpu.dot_dimension_numbers<[2], [1], [1], [2], [0, 0, 0, 1, 1, 2], [0], [0]>} : vector<1x8x8xf32>, vector<1x8x8xf32>, vector<1x8x8xf32> -> vector<1x8x8xf32>
    "tpu.trace_stop"() : () -> ()
    %74 = vector.shape_cast %73 : vector<1x8x8xf32> to vector<8x8xf32>
    %c0_27 = arith.constant 0 : index
    %c8 = arith.constant 8 : index
    %75 = vector.load %arg16[%c0_27, %c8] : memref<8x32xf32, #tpu.memory_space<vmem>>, vector<8x8xf32>
    tpu.vector_store %arg16[%c0_27, %c8], %74 {strides = array<i32>} : memref<8x32xf32, #tpu.memory_space<vmem>>, vector<8x8xf32>,
    %76 = vector.extract_strided_slice %30 {offsets = [0, 16], sizes = [8, 8], strides = [1, 1]} : vector<8x96xf32> to vector<8x8xf32>
    %77 = vector.shape_cast %76 : vector<8x8xf32> to vector<1x8x8xf32>
    %78 = vector.extract_strided_slice %30 {offsets = [0, 48], sizes = [8, 8], strides = [1, 1]} : vector<8x96xf32> to vector<8x8xf32>
    %79 = vector.shape_cast %78 : vector<8x8xf32> to vector<1x8x8xf32>
    %80 = vector.extract_strided_slice %30 {offsets = [0, 80], sizes = [8, 8], strides = [1, 1]} : vector<8x96xf32> to vector<8x8xf32>
    %81 = vector.shape_cast %80 : vector<8x8xf32> to vector<1x8x8xf32>
    "tpu.trace_start"() <{level = 10 : i32, message = "bqd,bkd->bqk"}> : () -> ()
    %cst_28 = arith.constant dense<0.000000e+00> : vector<1x8x8xf32>
    %82 = tpu.matmul %77, %79, %cst_28 {dimension_numbers = #tpu.dot_dimension_numbers<[2], [2], [1], [1], [0, 0, 0, 1, 1, 1], [0], [0]>} : vector<1x8x8xf32>, vector<1x8x8xf32>, vector<1x8x8xf32> -> vector<1x8x8xf32>
    "tpu.trace_stop"() : () -> ()
    %83 = vector.shape_cast %31 : vector<8x8xf32> to vector<1x8x8xf32>
    %84 = arith.addf %82, %83 : vector<1x8x8xf32>
    %cst_29 = arith.constant dense<0xFF800000> : vector<1x8xf32>
    %85 = vector.multi_reduction <maximumf>, %84, %cst_29 [2] : vector<1x8x8xf32> to vector<1x8xf32>
    %86 = vector.shape_cast %85 : vector<1x8xf32> to vector<1x8x1xf32>
    %87 = vector.broadcast %86 : vector<1x8x1xf32> to vector<1x8x8xf32>
    %88 = arith.subf %84, %87 : vector<1x8x8xf32>
    %89 = math.exp %88 : vector<1x8x8xf32>
    %cst_30 = arith.constant dense<0.000000e+00> : vector<1x8xf32>
    %90 = vector.multi_reduction <add>, %89, %cst_30 [2] : vector<1x8x8xf32> to vector<1x8xf32>
    %91 = vector.shape_cast %90 : vector<1x8xf32> to vector<1x8x1xf32>
    %92 = tpu.reciprocal %91 {approx = true} : vector<1x8x1xf32> -> vector<1x8x1xf32>
    %93 = vector.broadcast %92 : vector<1x8x1xf32> to vector<1x8x8xf32>
    %94 = arith.mulf %89, %93 : vector<1x8x8xf32>
    "tpu.trace_start"() <{level = 10 : i32, message = "bqk,bkd->bqd"}> : () -> ()
    %cst_31 = arith.constant dense<0.000000e+00> : vector<1x8x8xf32>
    %95 = tpu.matmul %94, %81, %cst_31 {dimension_numbers = #tpu.dot_dimension_numbers<[2], [1], [1], [2], [0, 0, 0, 1, 1, 2], [0], [0]>} : vector<1x8x8xf32>, vector<1x8x8xf32>, vector<1x8x8xf32> -> vector<1x8x8xf32>
    "tpu.trace_stop"() : () -> ()
    %96 = vector.shape_cast %95 : vector<1x8x8xf32> to vector<8x8xf32>
    %c0_32 = arith.constant 0 : index
    %c16 = arith.constant 16 : index
    %97 = vector.load %arg16[%c0_32, %c16] : memref<8x32xf32, #tpu.memory_space<vmem>>, vector<8x8xf32>
    tpu.vector_store %arg16[%c0_32, %c16], %96 {strides = array<i32>} : memref<8x32xf32, #tpu.memory_space<vmem>>, vector<8x8xf32>,
    %98 = vector.extract_strided_slice %30 {offsets = [0, 24], sizes = [8, 8], strides = [1, 1]} : vector<8x96xf32> to vector<8x8xf32>
    %99 = vector.shape_cast %98 : vector<8x8xf32> to vector<1x8x8xf32>
    %100 = vector.extract_strided_slice %30 {offsets = [0, 56], sizes = [8, 8], strides = [1, 1]} : vector<8x96xf32> to vector<8x8xf32>
    %101 = vector.shape_cast %100 : vector<8x8xf32> to vector<1x8x8xf32>
    %102 = vector.extract_strided_slice %30 {offsets = [0, 88], sizes = [8, 8], strides = [1, 1]} : vector<8x96xf32> to vector<8x8xf32>
    %103 = vector.shape_cast %102 : vector<8x8xf32> to vector<1x8x8xf32>
    "tpu.trace_start"() <{level = 10 : i32, message = "bqd,bkd->bqk"}> : () -> ()
    %cst_33 = arith.constant dense<0.000000e+00> : vector<1x8x8xf32>
    %104 = tpu.matmul %99, %101, %cst_33 {dimension_numbers = #tpu.dot_dimension_numbers<[2], [2], [1], [1], [0, 0, 0, 1, 1, 1], [0], [0]>} : vector<1x8x8xf32>, vector<1x8x8xf32>, vector<1x8x8xf32> -> vector<1x8x8xf32>
    "tpu.trace_stop"() : () -> ()
    %105 = vector.shape_cast %31 : vector<8x8xf32> to vector<1x8x8xf32>
    %106 = arith.addf %104, %105 : vector<1x8x8xf32>
    %cst_34 = arith.constant dense<0xFF800000> : vector<1x8xf32>
    %107 = vector.multi_reduction <maximumf>, %106, %cst_34 [2] : vector<1x8x8xf32> to vector<1x8xf32>
    %108 = vector.shape_cast %107 : vector<1x8xf32> to vector<1x8x1xf32>
    %109 = vector.broadcast %108 : vector<1x8x1xf32> to vector<1x8x8xf32>
    %110 = arith.subf %106, %109 : vector<1x8x8xf32>
    %111 = math.exp %110 : vector<1x8x8xf32>
    %cst_35 = arith.constant dense<0.000000e+00> : vector<1x8xf32>
    %112 = vector.multi_reduction <add>, %111, %cst_35 [2] : vector<1x8x8xf32> to vector<1x8xf32>
    %113 = vector.shape_cast %112 : vector<1x8xf32> to vector<1x8x1xf32>
    %114 = tpu.reciprocal %113 {approx = true} : vector<1x8x1xf32> -> vector<1x8x1xf32>
    %115 = vector.broadcast %114 : vector<1x8x1xf32> to vector<1x8x8xf32>
    %116 = arith.mulf %111, %115 : vector<1x8x8xf32>
    "tpu.trace_start"() <{level = 10 : i32, message = "bqk,bkd->bqd"}> : () -> ()
    %cst_36 = arith.constant dense<0.000000e+00> : vector<1x8x8xf32>
    %117 = tpu.matmul %116, %103, %cst_36 {dimension_numbers = #tpu.dot_dimension_numbers<[2], [1], [1], [2], [0, 0, 0, 1, 1, 2], [0], [0]>} : vector<1x8x8xf32>, vector<1x8x8xf32>, vector<1x8x8xf32> -> vector<1x8x8xf32>
    "tpu.trace_stop"() : () -> ()
    %118 = vector.shape_cast %117 : vector<1x8x8xf32> to vector<8x8xf32>
    %c0_37 = arith.constant 0 : index
    %c24 = arith.constant 24 : index
    %119 = vector.load %arg16[%c0_37, %c24] : memref<8x32xf32, #tpu.memory_space<vmem>>, vector<8x8xf32>
    tpu.vector_store %arg16[%c0_37, %c24], %118 {strides = array<i32>} : memref<8x32xf32, #tpu.memory_space<vmem>>, vector<8x8xf32>,
    %c0_38 = arith.constant 0 : index
    %c0_39 = arith.constant 0 : index
    %120 = vector.load %arg16[%c0_38, %c0_39] : memref<8x32xf32, #tpu.memory_space<vmem>>, vector<8x32xf32>
    %c0_40 = arith.constant 0 : index
    %c0_41 = arith.constant 0 : index
    %121 = vector.load %arg7[%c0_40, %c0_41] : memref<32x32xf32, #tpu.memory_space<vmem>>, vector<32x32xf32>
    %cst_42 = arith.constant dense<0.000000e+00> : vector<8x32xf32>
    %122 = tpu.matmul %120, %121, %cst_42 {dimension_numbers = #tpu.dot_dimension_numbers<[1], [0], [0], [1], [0, 0, 1, 1], [], []>} : vector<8x32xf32>, vector<32x32xf32>, vector<8x32xf32> -> vector<8x32xf32>
    %c0_43 = arith.constant 0 : index
    %c0_44 = arith.constant 0 : index
    %123 = vector.load %arg8[%c0_43, %c0_44] : memref<1x32xf32, #tpu.memory_space<vmem>>, vector<1x32xf32>
    %124 = vector.broadcast %123 : vector<1x32xf32> to vector<8x32xf32>
    %125 = arith.addf %122, %124 : vector<8x32xf32>
    %126 = arith.addf %1, %125 : vector<8x32xf32>
    %c0_45 = arith.constant 0 : index
    %c0_46 = arith.constant 0 : index
    %127 = vector.load %arg9[%c0_45, %c0_46] : memref<1x32xf32, #tpu.memory_space<vmem>>, vector<1x32xf32>
    %c0_47 = arith.constant 0 : index
    %c0_48 = arith.constant 0 : index
    %128 = vector.load %arg10[%c0_47, %c0_48] : memref<1x32xf32, #tpu.memory_space<vmem>>, vector<1x32xf32>
    %cst_49 = arith.constant dense<0.000000e+00> : vector<8xf32>
    %129 = vector.multi_reduction <add>, %126, %cst_49 [1] : vector<8x32xf32> to vector<8xf32>
    %130 = vector.shape_cast %129 : vector<8xf32> to vector<8x1xf32>
    %cst_50 = arith.constant 3.200000e+01 : f32
    %131 = vector.broadcast %cst_50 : f32 to vector<8x1xf32>
    %132 = arith.divf %130, %131 : vector<8x1xf32>
    %133 = vector.broadcast %132 : vector<8x1xf32> to vector<8x32xf32>
    %134 = arith.subf %126, %133 : vector<8x32xf32>
    %135 = arith.mulf %134, %134 : vector<8x32xf32>
    %cst_51 = arith.constant dense<0.000000e+00> : vector<8xf32>
    %136 = vector.multi_reduction <add>, %135, %cst_51 [1] : vector<8x32xf32> to vector<8xf32>
    %137 = vector.shape_cast %136 : vector<8xf32> to vector<8x1xf32>
    %cst_52 = arith.constant 3.200000e+01 : f32
    %138 = vector.broadcast %cst_52 : f32 to vector<8x1xf32>
    %139 = arith.divf %137, %138 : vector<8x1xf32>
    %140 = vector.broadcast %132 : vector<8x1xf32> to vector<8x32xf32>
    %141 = arith.subf %126, %140 : vector<8x32xf32>
    %cst_53 = arith.constant 9.99999974E-6 : f32
    %142 = vector.broadcast %cst_53 : f32 to vector<8x1xf32>
    %143 = arith.addf %139, %142 : vector<8x1xf32>
    %144 = math.rsqrt %143 : vector<8x1xf32>
    %145 = vector.broadcast %144 : vector<8x1xf32> to vector<8x32xf32>
    %146 = arith.mulf %141, %145 : vector<8x32xf32>
    %147 = vector.broadcast %127 : vector<1x32xf32> to vector<8x32xf32>
    %148 = arith.mulf %146, %147 : vector<8x32xf32>
    %149 = vector.broadcast %128 : vector<1x32xf32> to vector<8x32xf32>
    %150 = arith.addf %148, %149 : vector<8x32xf32>
    %c0_54 = arith.constant 0 : index
    %c0_55 = arith.constant 0 : index
    %151 = vector.load %arg11[%c0_54, %c0_55] : memref<32x128xf32, #tpu.memory_space<vmem>>, vector<32x128xf32>
    %cst_56 = arith.constant dense<0.000000e+00> : vector<8x128xf32>
    %152 = tpu.matmul %150, %151, %cst_56 {dimension_numbers = #tpu.dot_dimension_numbers<[1], [0], [0], [1], [0, 0, 1, 1], [], []>} : vector<8x32xf32>, vector<32x128xf32>, vector<8x128xf32> -> vector<8x128xf32>
    %c0_57 = arith.constant 0 : index
    %c0_58 = arith.constant 0 : index
    %153 = vector.load %arg12[%c0_57, %c0_58] : memref<1x128xf32, #tpu.memory_space<vmem>>, vector<1x128xf32>
    %154 = vector.broadcast %153 : vector<1x128xf32> to vector<8x128xf32>
    %155 = arith.addf %152, %154 : vector<8x128xf32>
    %156 = arith.mulf %155, %155 : vector<8x128xf32>
    %157 = arith.mulf %156, %155 : vector<8x128xf32>
    %cst_59 = arith.constant 5.000000e-01 : f32
    %158 = vector.broadcast %cst_59 : f32 to vector<8x128xf32>
    %159 = arith.mulf %158, %155 : vector<8x128xf32>
    %cst_60 = arith.constant 4.471500e-02 : f32
    %160 = vector.broadcast %cst_60 : f32 to vector<8x128xf32>
    %161 = arith.mulf %160, %157 : vector<8x128xf32>
    %162 = arith.addf %155, %161 : vector<8x128xf32>
    %cst_61 = arith.constant 0.797884583 : f32
    %163 = vector.broadcast %cst_61 : f32 to vector<8x128xf32>
    %164 = arith.mulf %163, %162 : vector<8x128xf32>
    %165 = math.tanh %164 : vector<8x128xf32>
    %cst_62 = arith.constant 1.000000e+00 : f32
    %166 = vector.broadcast %cst_62 : f32 to vector<8x128xf32>
    %167 = arith.addf %166, %165 : vector<8x128xf32>
    %168 = arith.mulf %159, %167 : vector<8x128xf32>
    %c0_63 = arith.constant 0 : index
    %c0_64 = arith.constant 0 : index
    %169 = vector.load %arg13[%c0_63, %c0_64] : memref<128x32xf32, #tpu.memory_space<vmem>>, vector<128x32xf32>
    %cst_65 = arith.constant dense<0.000000e+00> : vector<8x32xf32>
    %170 = tpu.matmul %168, %169, %cst_65 {dimension_numbers = #tpu.dot_dimension_numbers<[1], [0], [0], [1], [0, 0, 1, 1], [], []>} : vector<8x128xf32>, vector<128x32xf32>, vector<8x32xf32> -> vector<8x32xf32>
    %c0_66 = arith.constant 0 : index
    %c0_67 = arith.constant 0 : index
    %171 = vector.load %arg14[%c0_66, %c0_67] : memref<1x32xf32, #tpu.memory_space<vmem>>, vector<1x32xf32>
    %172 = vector.broadcast %171 : vector<1x32xf32> to vector<8x32xf32>
    %173 = arith.addf %170, %172 : vector<8x32xf32>
    %174 = arith.addf %126, %173 : vector<8x32xf32>
    %175 = vector.shape_cast %174 : vector<8x32xf32> to vector<1x8x32xf32>
    %c0_68 = arith.constant 0 : index
    %c0_69 = arith.constant 0 : index
    %c0_70 = arith.constant 0 : index
    %176 = vector.load %arg15[%c0_68, %c0_69, %c0_70] : memref<1x8x32xf32, #tpu.memory_space<vmem>>, vector<1x8x32xf32>
    tpu.vector_store %arg15[%c0_68, %c0_69, %c0_70], %175 {strides = array<i32>} : memref<1x8x32xf32, #tpu.memory_space<vmem>>, vector<1x8x32xf32>,
    return
  }
  func.func @transform_0(%arg0: i32) -> (i32, i32, i32) {
    %c0_i32 = arith.constant 0 : i32
    %c0_i32_0 = arith.constant 0 : i32
    %c0_i32_1 = arith.constant 0 : i32
    return %arg0, %c0_i32, %c0_i32_0 : i32, i32, i32
  }
  func.func @transform_1(%arg0: i32) -> (i32, i32) {
    %c0_i32 = arith.constant 0 : i32
    %c0_i32_0 = arith.constant 0 : i32
    %c0_i32_1 = arith.constant 0 : i32
    return %c0_i32, %c0_i32_0 : i32, i32
  }
  func.func @transform_2(%arg0: i32) -> (i32, i32) {
    %c0_i32 = arith.constant 0 : i32
    %c0_i32_0 = arith.constant 0 : i32
    %c0_i32_1 = arith.constant 0 : i32
    return %c0_i32, %c0_i32_0 : i32, i32
  }
  func.func @transform_3(%arg0: i32) -> (i32, i32) {
    %c0_i32 = arith.constant 0 : i32
    %c0_i32_0 = arith.constant 0 : i32
    %c0_i32_1 = arith.constant 0 : i32
    return %c0_i32, %c0_i32_0 : i32, i32
  }
  func.func @transform_4(%arg0: i32) -> (i32, i32) {
    %c0_i32 = arith.constant 0 : i32
    %c0_i32_0 = arith.constant 0 : i32
    %c0_i32_1 = arith.constant 0 : i32
    return %c0_i32, %c0_i32_0 : i32, i32
  }
  func.func @transform_5(%arg0: i32) -> (i32, i32) {
    %c0_i32 = arith.constant 0 : i32
    %c0_i32_0 = arith.constant 0 : i32
    %c0_i32_1 = arith.constant 0 : i32
    return %c0_i32, %c0_i32_0 : i32, i32
  }
  func.func @transform_6(%arg0: i32) -> (i32, i32) {
    %c0_i32 = arith.constant 0 : i32
    %c0_i32_0 = arith.constant 0 : i32
    %c0_i32_1 = arith.constant 0 : i32
    return %c0_i32, %c0_i32_0 : i32, i32
  }
  func.func @transform_7(%arg0: i32) -> (i32, i32) {
    %c0_i32 = arith.constant 0 : i32
    %c0_i32_0 = arith.constant 0 : i32
    %c0_i32_1 = arith.constant 0 : i32
    return %c0_i32, %c0_i32_0 : i32, i32
  }
  func.func @transform_8(%arg0: i32) -> (i32, i32) {
    %c0_i32 = arith.constant 0 : i32
    %c0_i32_0 = arith.constant 0 : i32
    %c0_i32_1 = arith.constant 0 : i32
    return %c0_i32, %c0_i32_0 : i32, i32
  }
  func.func @transform_9(%arg0: i32) -> (i32, i32) {
    %c0_i32 = arith.constant 0 : i32
    %c0_i32_0 = arith.constant 0 : i32
    %c0_i32_1 = arith.constant 0 : i32
    return %c0_i32, %c0_i32_0 : i32, i32
  }
  func.func @transform_10(%arg0: i32) -> (i32, i32) {
    %c0_i32 = arith.constant 0 : i32
    %c0_i32_0 = arith.constant 0 : i32
    %c0_i32_1 = arith.constant 0 : i32
    return %c0_i32, %c0_i32_0 : i32, i32
  }
  func.func @transform_11(%arg0: i32) -> (i32, i32) {
    %c0_i32 = arith.constant 0 : i32
    %c0_i32_0 = arith.constant 0 : i32
    %c0_i32_1 = arith.constant 0 : i32
    return %c0_i32, %c0_i32_0 : i32, i32
  }
  func.func @transform_12(%arg0: i32) -> (i32, i32) {
    %c0_i32 = arith.constant 0 : i32
    %c0_i32_0 = arith.constant 0 : i32
    %c0_i32_1 = arith.constant 0 : i32
    return %c0_i32, %c0_i32_0 : i32, i32
  }
  func.func @transform_13(%arg0: i32) -> (i32, i32) {
    %c0_i32 = arith.constant 0 : i32
    %c0_i32_0 = arith.constant 0 : i32
    %c0_i32_1 = arith.constant 0 : i32
    return %c0_i32, %c0_i32_0 : i32, i32
  }
  func.func @transform_14(%arg0: i32) -> (i32, i32, i32) {
    %c0_i32 = arith.constant 0 : i32
    %c0_i32_0 = arith.constant 0 : i32
    %c0_i32_1 = arith.constant 0 : i32
    return %arg0, %c0_i32, %c0_i32_0 : i32, i32, i32
  }
}

</mosaic_0001>

<bundles_post_ra>
// kernel: tpu_custom_call.1
= control target key start
LH: loop header
LB: loop body
LE: loop exit
PB: predicated region body
PF: predicated region fallthrough
CT: control target
= control target key end

     0   :  { %s2366_s0 = inlined_call_operand.vmem [shape: f32[2,8,32], index: 0, kind: input, shape index: {}]   ;;  %s2367_s1 = inlined_call_operand.vmem [shape: f32[8,8], index: 1, kind: input, shape index: {}]   ;;  %s2368_s2 = inlined_call_operand.vmem [shape: f32[1,32], index: 2, kind: input, shape index: {}]   ;;  %s2369_s3 = inlined_call_operand.vmem [shape: f32[1,32], index: 3, kind: input, shape index: {}]   ;;  %s2370_s4 = inlined_call_operand.vmem [shape: f32[32,96], index: 4, kind: input, shape index: {}]   ;;  %s2371_s5 = inlined_call_operand.vmem [shape: f32[1,96], index: 5, kind: input, shape index: {}]   ;;  %s2372_s6 = inlined_call_operand.vmem [shape: f32[32,32], index: 6, kind: input, shape index: {}]   ;;  %s2373_s7 = inlined_call_operand.vmem [shape: f32[1,32], index: 7, kind: input, shape index: {}]   ;;  %s2374_s8 = inlined_call_operand.vmem [shape: f32[1,32], index: 8, kind: input, shape index: {}]   ;;  %s2375_s9 = inlined_call_operand.vmem [shape: f32[1,32], index: 9, kind: input, shape index: {}]   ;;  %s2376_s10 = inlined_call_operand.vmem [shape: f32[32,128], index: 10, kind: input, shape index: {}]   ;;  %s2377_s11 = inlined_call_operand.vmem [shape: f32[1,128], index: 11, kind: input, shape index: {}]   ;;  %s2378_s12 = inlined_call_operand.vmem [shape: f32[128,32], index: 12, kind: input, shape index: {}]   ;;  %s2379_s13 = inlined_call_operand.vmem [shape: f32[1,32], index: 13, kind: input, shape index: {}]   ;;  %s2380_s14 = inlined_call_operand.hbm [shape: f32[2,8,32], index: 14, kind: output, shape index: {}]  }
   0x1   :  { %2381 = sst [smem:[#allocation6_spill]] %s2366_s0 }
   0x2   :  { %2382 = sst [smem:[#allocation7_spill]] %s2367_s1 }
   0x3   :  { %2383 = sst [smem:[#allocation8_spill]] %s2368_s2 }
   0x4   :  { %2384 = sst [smem:[#allocation9_spill]] %s2369_s3 }
   0x5   :  { %2385 = sst [smem:[#allocation10_spill]] %s2370_s4 }
   0x6   :  { %19 = vsyncpa [#allocation4], 0 }
   0x7   :  { %21 = vsyncpa [#allocation4 + $0x1], 0  ;;  %s2055_s29 = smov 0   ;;  %s2057_s30 = smov 0  }
   0x8   :  { %s2059_s15 = smov 0   ;;  %s2061_s16 = smov 0  }
   0x9 LB: > { %s2076_s17 = sadd.s32 4294967295, %s1961_s16   ;;  %s1635_s18 = sadd.s32 4294967294, %s1961_s16   ;;  %s1961_s16 = sphi %s2061_s16, %s2396_s16   ;;  %s1957_s15 = sphi %s2059_s15, %s2395_s15   ;;  %s1953_s30 = sphi %s2057_s30, %s2394_s30   ;;  %s1949_s29 = sphi %s2055_s29, %s2393_s29  }
   0xa   : > { %s2080_s19 = sadd.s32 1, %s1961_s16   ;;  %s333_s20 = sadd.s32 1, %s1957_s15 }
   0xb   : > { %s330_s21 = ssub.s32 %s1961_s16, %s2080_s19  ;;  %p343_p0 = scmp.ne.s32.totalorder %s1957_s15, %s1953_s30 }
   0xc   : > { %p331_p1 = scmp.eq.s32.totalorder %s330_s21, 0  ;;  %p344_p2 = scmp.eq.s32.totalorder %s2076_s17, 1 }
   0xd   : > { %p349_p3 = scmp.ne.s32.totalorder %s1953_s30, %s1949_s29  ;;  %p350_p4 = scmp.eq.s32.totalorder %s1635_s18, 1 }
   0xe   : > { %s2091_s22 = scalar_select %p331_p1, %s1957_s15, %s333_s20  }
   0xf   : > { %p2093_p5 = por %p344_p2, %p343_p0  ;;  %p2097_p6 = por %p350_p4, %p349_p3 }
  0x10   : > { %p1638_p7 = scmp.ge.s32.totalorder %s1961_s16, 1  ;;  %p414_p8 = scmp.lt.s32.totalorder %s1961_s16, 3 }
  0x12   : > { %p415_p9 = pnand %p1638_p7, %p414_p8 }
  0x13   : > { %p459_p10 = scmp.lt.s32.totalorder (!%p415_p9), %s2076_s17, 1  ;;  %s2388_s0 = sld [smem:[#allocation6_spill]] (!%p415_p9) }
  0x14   : > { %418 = sbr.rel (%p415_p9) target bundleno = 2429 (0x97d), region = 76  ;;  %s2389_s4 = sld [smem:[#allocation10_spill]] (!%p415_p9) }
  0x15   : > { %s2390_s2 = sld [smem:[#allocation8_spill]] (!%p415_p9)  ;;  %s1965_s20 = smov (!%p415_p9), 120  }
  0x16   : > { %s2391_s3 = sld [smem:[#allocation9_spill]] (!%p415_p9)  ;;  %s1966_s21 = smov (!%p415_p9), 96  }
  0x17   : > { %s1969_s27 = smov (!%p415_p9), 112   ;;  %s1970_s28 = smov (!%p415_p9), 72  }
  0x18   : > { %s2392_s1 = sld [smem:[#allocation7_spill]] (!%p415_p9) }
  0x19   : > { %s460_s25 = scalar_select %p459_p10, %s2076_s17, 1  ;;  %vm466_vm0 = vcmask 261120   ;;  %v1963_v8 = vmov 0.0   ;;  %vm1964_vm1 = vmmov 0   ;;  %v1643_v21 = vld [vmem:[%s2371_s5] ss:$0 sm:$0xff] }
  0x1a   : > { %v498_v7 = vld [vmem:[%s2389_s4 + $0x18] sm:$0xff]  ;;  %1716 = vmatprep.subr.mxu1 %v1963_v8  ;;  %v497_v9 = vld [vmem:[%s2389_s4 + $0x10] sm:$0xff]  ;;  %1724 = vmatprep.mubr.msk.f32.mxu1 %vm1964_vm1, %v1963_v8  ;;  %v496_v10 = vld [vmem:[%s2389_s4 + $0x8] sm:$0xff]  ;;  %vm583_vm2 = vcmask 64512   ;;  %vm915_vm3 = vcmask 130112   ;;  %vm1086_vm4 = vcmask 195712  }
  0x1b   : > { %s1640_s26 = sshll.u32 %s460_s25, 3  ;;  %1717 = vmatpush3.msra.mxu1 %v498_v7  ;;  %1737 = vmatprep.subr.mxu0 %v1963_v8  ;;  %v495_v11 = vld [vmem:[%s2389_s4] sm:$0xff]  ;;  %s1967_s25 = smov 88   ;;  %vm1257_vm5 = vcmask 261312  }
  0x1c   : > { %s462_s18 = scalar_lea.vmem %s2388_s0, %s1640_s26  ;;  %1718 = vmatprep.subr.mxu1 %v1963_v8  ;;  %1739 = vmatprep.mubr.msk.f32.mxu0 %vm1964_vm1, %v1963_v8  ;;  %v1641_v16 = vld [vmem:[%s2390_s2] ss:$0 sm:$0xff]  ;;  %s1968_s26 = smov 80  }
  0x1d   : > { %v2108_v0 = vld [vmem:[%s462_s18] sm:$0xff]  ;;  %1719 = vmatpush3.msra.mxu1 %v497_v9  ;;  %s1971_s18 = smov 104  }
  0x1e   : > { %v467_v1 = vsel %vm466_vm0, %v2108_v0, 0.0  ;;  %1720 = vmatprep.subr.mxu1 %v1963_v8  ;;  %v1642_v18 = vld [vmem:[%s2391_s3] ss:$0 sm:$0xff] }
  0x1f   : > { %468 = vadd.xlane.f32.xlu0 %v467_v1  ;;  %1721 = vmatpush3.msra.mxu1 %v496_v10  ;;  %v579_v32 = vld [vmem:[%s2392_s1] sm:$0xff] }
  0x20   : > { %1722 = vmatprep.subr.mxu1 %v1963_v8 }
  0x21   : > { %1723 = vmatpush3.msra.mxu1 %v495_v11 }
  0x22   : > { %1727 = vmatprep.subr.mxu1 %v1963_v8 }
  0xa8   : > { %v469_v2 = vpop.xlane.xlu0 %468 }
  0xa9   : > { %v471_v3 = vmul.f32 0.03125, %v469_v2 }
  0xab   : > { %v472_v4 = vsub.f32 %v2108_v0, %v471_v3 }
  0xad   : > { %v473_v5 = vmul.f32 %v472_v4, %v472_v4 }
  0xaf   : > { %v474_v6 = vsel %vm466_vm0, %v473_v5, 0.0 }
  0xb0   : > { %475 = vadd.xlane.f32.xlu0 %v474_v6 }
 0x139   : > { %v476_v12 = vpop.xlane.xlu0 %475 }
 0x13a   : > { %v477_v13 = vmul.f32 0.03125, %v476_v12 }
 0x13c   : > { %v478_v14 = vadd.f32 1e-05, %v477_v13 }
 0x13e   : > { %1879 = vrsqrt.f32 %v478_v14 }
 0x14b   : > { %v1880_v15 = vpop.eup %1879 }
 0x14c   : > { %v480_v17 = vmul.f32 %v1880_v15, %v472_v4 }
 0x14e   : > { %v487_v19 = vmul.f32 %v1641_v16, %v480_v17 }
 0x150   : > { %v494_v20 = vadd.f32 %v1642_v18, %v487_v19 }
 0x152   : > { %1725 = vmatmul.mubr.msk.f32.vlgmr.msra.gmra.mxu1 %vm466_vm0, %v494_v20 }
 0x153   : > { %1729 = vmatprep.mubr.msk.f32.mxu1 %vm1964_vm1, %v1963_v8 }
 0x212   : > { %v575_v22 = vpop.f32.mrf.mxu1 }
 0x213   : > { %v2148_v23 = vadd.f32 %v1643_v21, %v575_v22 }
 0x214   : > { %v1726_v24 = vpop.f32.mrf.mxu1 }
 0x215   : > { %746 = vrot.lane.b32.xlu0 %v2148_v23, %s1965_s20  ;;  %581 = vrot.lane.b32.xlu1 %v2148_v23, %s1966_s21  ;;  %s1977_s21 = smov 16   ;;  %s1665_s20 = sshll.u32 %s2076_s17, 7 }
 0x216   : > { %s1574_s2 = scalar_lea.hbm %s2380_s14, %s1665_s20  ;;  %s1979_s17 = smov [#allocation3]  }
 0x219   : > { %748 = vrot.lane.b32.xlu1 %v2148_v23, %s1967_s25  ;;  %s1972_s25 = smov 64  }
 0x21d   : > { %919 = vrot.lane.b32.xlu1 %v2148_v23, %s1968_s26  ;;  %s1973_s26 = smov 48  }
 0x221   : > { %917 = vrot.lane.b32.xlu1 %v2148_v23, %s1969_s27  ;;  %s1974_s27 = smov 40  }
 0x225   : > { %1090 = vrot.lane.b32.xlu1 %v2148_v23, %s1970_s28  ;;  %s1975_s28 = smov 56  }
 0x229   : > { %1088 = vrot.lane.b32.xlu1 %v2148_v23, %s1971_s18 }
 0x287   : > { %v582_v25 = vpop.permute.xlu1 %581  ;;  %v747_v27 = vpop.permute.xlu0 %746 }
 0x288   : > { %1728 = vmatpush3.xpose.msk.msra.mxu1 %vm583_vm2, %v582_v25  ;;  %v1263_v25 = vld [vmem:[%s2372_s6 + $0x18] sm:$0xff] }
 0x289   : > { %1732 = vmatprep.subr.mxu1 %v1963_v8 }
 0x28b   : > { %1730 = vmatmul.mubr.msk.f32.vlgmr.msra.gmra.mxu1 %vm583_vm2, %v2148_v23  ;;  %v749_v26 = vpop.permute.xlu1 %748 }
 0x28c   : > { %1738 = vmatpush3.xpose.msk.msra.mxu0 %vm583_vm2, %v749_v26  ;;  %1734 = vmatprep.mubr.msk.f32.mxu1 %vm1964_vm1, %v1963_v8  ;;  %v1262_v26 = vld [vmem:[%s2372_s6 + $0x10] sm:$0xff] }
 0x28d   : > { %1747 = vmatprep.subr.mxu0 %v1963_v8 }
 0x28f   : > { %1740 = vmatmul.mubr.msk.f32.vlgmr.msra.gmra.mxu0 %vm583_vm2, %v747_v27  ;;  %v920_v28 = vpop.permute.xlu1 %919 }
 0x290   : > { %1748 = vmatpush3.xpose.msk.msra.mxu0 %vm583_vm2, %v920_v28  ;;  %1749 = vmatprep.mubr.msk.f32.mxu0 %vm1964_vm1, %v1963_v8  ;;  %v1261_v28 = vld [vmem:[%s2372_s6 + $0x8] sm:$0xff] }
 0x291   : > { %1757 = vmatprep.subr.mxu0 %v1963_v8 }
 0x293   : > { %v918_v29 = vpop.permute.xlu1 %917 }
 0x294   : > { %1750 = vmatmul.mubr.msk.f32.vlgmr.msra.gmra.mxu0 %vm583_vm2, %v918_v29 }
 0x295   : > { %1759 = vmatprep.mubr.msk.f32.mxu0 %vm1964_vm1, %v1963_v8 }
 0x297   : > { %v1091_v30 = vpop.permute.xlu1 %1090 }
 0x298   : > { %1758 = vmatpush3.xpose.msk.msra.mxu0 %vm583_vm2, %v1091_v30  ;;  %v1260_v30 = vld [vmem:[%s2372_s6] sm:$0xff] }
 0x299   : > { %1789 = vmatprep.subr.mxu0 %v1963_v8 }
 0x29b   : > { %v1089_v31 = vpop.permute.xlu1 %1088 }
 0x29c   : > { %1760 = vmatmul.mubr.msk.f32.vlgmr.msra.gmra.mxu0 %vm583_vm2, %v1089_v31 }
 0x29d   : > { %1821 = vmatprep.mubr.msk.f32.mxu0 %vm1964_vm1, %v1963_v8 }
 0x34b   : > { %v654_v33 = vpop.f32.mrf.mxu1 }
 0x34c   : > { %v655_v34 = vadd.f32 %v654_v33, %v579_v32 }
 0x34d   : > { %v1731_v35 = vpop.f32.mrf.mxu1 }
 0x34e   : > { %v658_v36 = vsel %vm583_vm2, %v655_v34, -inf }
 0x34f   : > { %v820_v37 = vpop.f32.mrf.mxu0  ;;  %659 = vmax.xlane.f32.xlu1 %v658_v36 }
 0x350   : > { %v821_v38 = vadd.f32 %v820_v37, %v579_v32 }
 0x351   : > { %v1741_v39 = vpop.f32.mrf.mxu0 }
 0x352   : > { %v824_v40 = vsel %vm583_vm2, %v821_v38, -inf  ;;  %v1657_v39 = vld [vmem:[%s2373_s7] ss:$0 sm:$0xff] }
 0x353   : > { %825 = vmax.xlane.f32.xlu0 %v824_v40 }
 0x354   : > { %v991_v41 = vpop.f32.mrf.mxu0 }
 0x355   : > { %v992_v42 = vadd.f32 %v991_v41, %v579_v32 }
 0x356   : > { %v1751_v43 = vpop.f32.mrf.mxu0 }
 0x357   : > { %v995_v44 = vsel %vm583_vm2, %v992_v42, -inf }
 0x358   : > { %996 = vmax.xlane.f32.xlu1 %v995_v44 }
 0x35c   : > { %v1162_v45 = vpop.f32.mrf.mxu0 }
 0x35d   : > { %v1163_v46 = vadd.f32 %v1162_v45, %v579_v32 }
 0x35e   : > { %v1761_v47 = vpop.f32.mrf.mxu0 }
 0x35f   : > { %v1166_v48 = vsel %vm583_vm2, %v1163_v46, -inf }
 0x360   : > { %1167 = vmax.xlane.f32.xlu0 %v1166_v48 }
 0x369   : > { %669 = vrot.lane.b32.xlu1 %v2148_v23, %s1972_s25  ;;  %s1978_s25 = smov 24  }
 0x3d8   : > { %v660_v49 = vpop.xlane.xlu1 %659 }
 0x3d9   : > { %v661_v50 = vsub.f32 %v655_v34, %v660_v49 }
 0x3db   : > { %v662_v51 = vmul.f32 1.442695, %v661_v50  ;;  %v1377_v50 = vld [vmem:[%s2376_s10 + $0x18] sm:$0xff] }
 0x3dc   : > { %v826_v52 = vpop.xlane.xlu0 %825 }
 0x3dd   : > { %1881 = vpow2.f32 %v662_v51  ;;  %v827_v53 = vsub.f32 %v821_v38, %v826_v52  ;;  %v1375_v51 = vld [vmem:[%s2376_s10 + $0x8] sm:$0xff]  ;;  %v1374_v52 = vld [vmem:[%s2376_s10] sm:$0xff] }
 0x3df   : > { %v828_v54 = vmul.f32 1.442695, %v827_v53 }
 0x3e1   : > { %1883 = vpow2.f32 %v828_v54  ;;  %v997_v55 = vpop.xlane.xlu1 %996 }
 0x3e2   : > { %v998_v56 = vsub.f32 %v992_v42, %v997_v55 }
 0x3e4   : > { %v999_v57 = vmul.f32 1.442695, %v998_v56 }
 0x3e5   : > { %v670_v58 = vpop.permute.xlu1 %669 }
 0x3e6   : > { %1885 = vpow2.f32 %v999_v57  ;;  %1733 = vmatpush3.msra.mxu1 %v670_v58  ;;  %v1659_v57 = vld [vmem:[%s2374_s8] ss:$0 sm:$0xff] }
 0x3e7   : > { %1742 = vmatprep.subr.mxu1 %v1963_v8 }
 0x3e9   : > { %v1168_v59 = vpop.xlane.xlu0 %1167 }
 0x3ea   : > { %v1882_v60 = vpop.eup %1881  ;;  %v1169_v61 = vsub.f32 %v1163_v46, %v1168_v59  ;;  %v1660_v59 = vld [vmem:[%s2375_s9] ss:$0 sm:$0xff] }
 0x3eb   : > { %v664_v62 = vsel %vm583_vm2, %v1882_v60, 0.0 }
 0x3ec   : > { %v1170_v63 = vmul.f32 1.442695, %v1169_v61  ;;  %665 = vadd.xlane.f32.xlu1 %v664_v62  ;;  %v1482_v62 = vld [vmem:[%s2378_s12 + $0x78] sm:$0xff] }
 0x3ed   : > { %1790 = vmatpush3.msra.mxu0 %v1482_v62 }
 0x3ee   : > { %v1884_v1 = vpop.eup %1883  ;;  %1887 = vpow2.f32 %v1170_v63  ;;  %1791 = vmatprep.subr.mxu0 %v1963_v8  ;;  %v1481_v63 = vld [vmem:[%s2378_s12 + $0x70] sm:$0xff] }
 0x3ef   : > { %v830_v2 = vsel %vm583_vm2, %v1884_v1, 0.0  ;;  %1792 = vmatpush3.msra.mxu0 %v1481_v63 }
 0x3f0   : > { %831 = vadd.xlane.f32.xlu0 %v830_v2  ;;  %1793 = vmatprep.subr.mxu0 %v1963_v8  ;;  %v1479_v2 = vld [vmem:[%s2378_s12 + $0x60] sm:$0xff] }
 0x3f3   : > { %v1886_v3 = vpop.eup %1885 }
 0x3f4   : > { %v1001_v4 = vsel %vm583_vm2, %v1886_v3, 0.0 }
 0x3f5   : > { %1002 = vadd.xlane.f32.xlu1 %v1001_v4  ;;  %v1477_v4 = vld [vmem:[%s2378_s12 + $0x50] sm:$0xff] }
 0x3fb   : > { %v1888_v5 = vpop.eup %1887 }
 0x3fc   : > { %v1172_v6 = vsel %vm583_vm2, %v1888_v5, 0.0 }
 0x3fd   : > { %1173 = vadd.xlane.f32.xlu0 %v1172_v6  ;;  %v1475_v6 = vld [vmem:[%s2378_s12 + $0x40] sm:$0xff] }
 0x406   : > { %1006 = vrot.lane.b32.xlu1 %v2148_v23, %s1973_s26  ;;  %s1976_s26 = smov 8  }
 0x40a   : > { %1177 = vrot.lane.b32.xlu1 %v2148_v23, %s1974_s27 }
 0x413   : > { %835 = vrot.lane.b32.xlu0 %v2148_v23, %s1975_s28 }
 0x475   : > { %v666_v7 = vpop.xlane.xlu1 %665 }
 0x476   : > { %1889 = vrcp.f32 %v666_v7  ;;  %v1474_v7 = vld [vmem:[%s2378_s12 + $0x38] sm:$0xff] }
 0x479   : > { %v832_v9 = vpop.xlane.xlu0 %831 }
 0x47a   : > { %1891 = vrcp.f32 %v832_v9  ;;  %v1473_v9 = vld [vmem:[%s2378_s12 + $0x30] sm:$0xff] }
 0x47e   : > { %v1003_v10 = vpop.xlane.xlu1 %1002 }
 0x47f   : > { %1893 = vrcp.f32 %v1003_v10  ;;  %v1472_v10 = vld [vmem:[%s2378_s12 + $0x28] sm:$0xff] }
 0x482   : > { %v1007_v15 = vpop.permute.xlu1 %1006 }
 0x483   : > { %v1890_v11 = vpop.eup %1889 }
 0x484   : > { %v668_v12 = vmul.f32 %v1890_v11, %v1882_v60  ;;  %v1471_v11 = vld [vmem:[%s2378_s12 + $0x20] sm:$0xff] }
 0x486   : > { %v1174_v13 = vpop.xlane.xlu0 %1173  ;;  %1735 = vmatmul.mubr.msk.f32.vlgmr.msra.gmra.mxu1 %vm583_vm2, %v668_v12  ;;  %v1178_v20 = vpop.permute.xlu1 %1177  ;;  %v1470_v12 = vld [vmem:[%s2378_s12 + $0x18] sm:$0xff] }
 0x487   : > { %v1892_v14 = vpop.eup %1891  ;;  %1895 = vrcp.f32 %v1174_v13  ;;  %1744 = vmatprep.mubr.msk.f32.mxu1 %vm1964_vm1, %v1963_v8  ;;  %v1469_v13 = vld [vmem:[%s2378_s12 + $0x10] sm:$0xff] }
 0x488   : > { %v834_v17 = vmul.f32 %v1892_v14, %v1884_v1  ;;  %v1480_v1 = vld [vmem:[%s2378_s12 + $0x68] sm:$0xff] }
 0x489   : > { %1794 = vmatpush3.msra.mxu0 %v1480_v1  ;;  %v1468_v14 = vld [vmem:[%s2378_s12 + $0x8] sm:$0xff] }
 0x48a   : > { %v836_v16 = vpop.permute.xlu0 %835  ;;  %1795 = vmatprep.subr.mxu0 %v1963_v8 }
 0x48b   : > { %1743 = vmatpush3.msra.mxu1 %v836_v16  ;;  %1796 = vmatpush3.msra.mxu0 %v1479_v2  ;;  %v1661_v16 = vld [vmem:[%s2377_s11] ss:$0 sm:$0xff] }
 0x48c   : > { %v1894_v18 = vpop.eup %1893  ;;  %1745 = vmatmul.mubr.msk.f32.vlgmr.msra.gmra.mxu1 %vm583_vm2, %v834_v17  ;;  %1752 = vmatprep.subr.mxu1 %v1963_v8 }
 0x48d   : > { %1753 = vmatpush3.msra.mxu1 %v1007_v15  ;;  %1754 = vmatprep.mubr.msk.f32.mxu1 %vm1964_vm1, %v1963_v8  ;;  %v1005_v19 = vmul.f32 %v1894_v18, %v1886_v3  ;;  %v1478_v3 = vld [vmem:[%s2378_s12 + $0x58] sm:$0xff]  ;;  %v1467_v15 = vld [vmem:[%s2378_s12] sm:$0xff] }
 0x48e   : > { %1762 = vmatprep.subr.mxu1 %v1963_v8  ;;  %1797 = vmatprep.subr.mxu0 %v1963_v8 }
 0x48f   : > { %1798 = vmatpush3.msra.mxu0 %v1478_v3 }
 0x490   : > { %1755 = vmatmul.mubr.msk.f32.vlgmr.msra.gmra.mxu1 %vm583_vm2, %v1005_v19  ;;  %1799 = vmatprep.subr.mxu0 %v1963_v8 }
 0x491   : > { %1763 = vmatpush3.msra.mxu1 %v1178_v20  ;;  %1764 = vmatprep.mubr.msk.f32.mxu1 %vm1964_vm1, %v1963_v8 }
 0x492   : > { %1767 = vmatprep.subr.mxu1 %v1963_v8  ;;  %1800 = vmatpush3.msra.mxu0 %v1477_v4 }
 0x493   : > { %1801 = vmatprep.subr.mxu0 %v1963_v8 }
 0x494   : > { %v1896_v21 = vpop.eup %1895 }
 0x495   : > { %v1176_v22 = vmul.f32 %v1896_v21, %v1888_v5  ;;  %v1476_v5 = vld [vmem:[%s2378_s12 + $0x48] sm:$0xff] }
 0x496   : > { %1802 = vmatpush3.msra.mxu0 %v1476_v5 }
 0x497   : > { %1765 = vmatmul.mubr.msk.f32.vlgmr.msra.gmra.mxu1 %vm583_vm2, %v1176_v22  ;;  %1803 = vmatprep.subr.mxu0 %v1963_v8 }
 0x498   : > { %1775 = vmatprep.mubr.msk.f32.mxu1 %vm1964_vm1, %v1963_v8  ;;  %1768 = vmatpush3.msra.mxu1 %v1263_v25 }
 0x499   : > { %1769 = vmatprep.subr.mxu1 %v1963_v8  ;;  %1804 = vmatpush3.msra.mxu0 %v1475_v6 }
 0x49a   : > { %1770 = vmatpush3.msra.mxu1 %v1262_v26  ;;  %1805 = vmatprep.subr.mxu0 %v1963_v8 }
 0x49b   : > { %1771 = vmatprep.subr.mxu1 %v1963_v8  ;;  %1806 = vmatpush3.msra.mxu0 %v1474_v7 }
 0x49c   : > { %1772 = vmatpush3.msra.mxu1 %v1261_v28  ;;  %1807 = vmatprep.subr.mxu0 %v1963_v8  ;;  %v1663_v28 = vld [vmem:[%s2379_s13] ss:$0 sm:$0xff] }
 0x49d   : > { %1773 = vmatprep.subr.mxu1 %v1963_v8  ;;  %1808 = vmatpush3.msra.mxu0 %v1473_v9 }
 0x49e   : > { %1774 = vmatpush3.msra.mxu1 %v1260_v30  ;;  %1809 = vmatprep.subr.mxu0 %v1963_v8 }
 0x49f   : > { %1778 = vmatprep.subr.mxu1 %v1963_v8  ;;  %1810 = vmatpush3.msra.mxu0 %v1472_v10 }
 0x4a0   : > { %1811 = vmatprep.subr.mxu0 %v1963_v8 }
 0x4a1   : > { %1812 = vmatpush3.msra.mxu0 %v1471_v11 }
 0x4a2   : > { %1813 = vmatprep.subr.mxu0 %v1963_v8 }
 0x4a3   : > { %1814 = vmatpush3.msra.mxu0 %v1470_v12 }
 0x4a4   : > { %1815 = vmatprep.subr.mxu0 %v1963_v8 }
 0x4a5   : > { %1816 = vmatpush3.msra.mxu0 %v1469_v13 }
 0x4a6   : > { %1817 = vmatprep.subr.mxu0 %v1963_v8 }
 0x4a7   : > { %1818 = vmatpush3.msra.mxu0 %v1468_v14 }
 0x4a8   : > { %1819 = vmatprep.subr.mxu0 %v1963_v8 }
 0x4a9   : > { %1820 = vmatpush3.msra.mxu0 %v1467_v15 }
 0x546   : > { %v741_v23 = vpop.f32.mrf.mxu1 }
 0x547   : > { %745 = vst.msk [vmem:[#allocation2] sm:$0xff] %vm583_vm2, %v741_v23 }
 0x548   : > { %v1736_v24 = vpop.f32.mrf.mxu1 }
 0x54c   : > { %v907_v27 = vpop.f32.mrf.mxu1 }
 0x54d   : > { %912 = vrot.lane.b32.xlu0 %v907_v27, %s1976_s26  ;;  %s456_s26 = sand.u32 1, %s1953_s30  }
 0x54e   : > { %v1746_v29 = vpop.f32.mrf.mxu1  ;;  %s1639_s27 = sshll.u32 %s456_s26, 3  ;;  %s1563_s3 = scalar_lea.sflag [#allocation4], %s456_s26 }
 0x550   : > { %v1078_v31 = vpop.f32.mrf.mxu1 }
 0x551   : > { %1083 = vrot.lane.b32.xlu1 %v1078_v31, %s1977_s21  ;;  %s458_s21 = scalar_lea.vmem [#allocation3], %s1639_s27  ;;  %s1905_s27 = sshll.u32 %s1979_s17, 4  ;;  %s1906_s27 = int_to_ptr.vmem [resolvable:$false] %s1905_s27 }
 0x552   : > { %v1756_v32 = vpop.f32.mrf.mxu1  ;;  %s1576_s0 = sshll.u32 %s458_s21, 4  ;;  %s1907_s28 = scalar_lea.vmem %s1906_s27, 256  ;;  %s1577_s0 = int_to_ptr.vmem [resolvable:$true] %s1576_s0 }
 0x553   : > { %s1901_s4 = scalar_lea.vmem %s1577_s0, 128  ;;  %p1908_p0 = scmp.lt.s32.totalorder %s1577_s0, %s1906_s27 }
 0x554   : > { %p1902_p11 = scmp.ne.s32.totalorder %s1577_s0, %s1901_s4  ;;  %p1909_p1 = scmp.lt.s32.totalorder %s1907_s28, %s1901_s4 }
 0x556   : > { %p1903_p12 = pnand %p1902_p11, %p2093_p5  ;;  %p1910_p2 = por %p1909_p1, %p1908_p0 }
 0x557   : > { %v1249_v33 = vpop.f32.mrf.mxu1 }
 0x558   : > { %1254 = vrot.lane.b32.xlu0 %v1249_v33, %s1978_s25  ;;  %p1904_p13 = pneg %p1903_p12 }
 0x559   : > { %v1766_v34 = vpop.f32.mrf.mxu1 }
 0x55a   : > { %p1911_p3 = pnand %p1910_p2, %p1904_p13 }
 0x5bf   : > { %v913_v35 = vpop.permute.xlu0 %912 }
 0x5c0   : > { %916 = vst.msk [vmem:[#allocation2] sm:$0xff] %vm915_vm3, %v913_v35 }
 0x5c3   : > { %v1084_v36 = vpop.permute.xlu1 %1083 }
 0x5c4   : > { %1087 = vst.msk [vmem:[#allocation2] sm:$0xff] %vm1086_vm4, %v1084_v36 }
 0x5ca   : > { %v1255_v37 = vpop.permute.xlu0 %1254 }
 0x5cb   : > { %1258 = vst.msk [vmem:[#allocation2] sm:$0xff] %vm1257_vm5, %v1255_v37 }
 0x5d2   : > { %v1259_v38 = vld [vmem:[#allocation2] sm:$0xff] }
 0x5d3   : > { %1776 = vmatmul.mubr.msk.f32.vlgmr.msra.gmra.mxu1 %vm466_vm0, %v1259_v38 }
 0x5d4   : > { %1786 = vmatprep.mubr.msk.f32.mxu1 %vm1964_vm1, %v1963_v8  ;;  %1779 = vmatpush3.msra.mxu1 %v1377_v50 }
 0x5d5   : > { %1780 = vmatprep.subr.mxu1 %v1963_v8 }
 0x693   : > { %v1340_v40 = vpop.f32.mrf.mxu1 }
 0x694   : > { %v1341_v41 = vadd.f32 %v1657_v39, %v1340_v40 }
 0x695   : > { %v1777_v42 = vpop.f32.mrf.mxu1 }
 0x696   : > { %v2233_v43 = vadd.f32 %v1341_v41, %v2108_v0  ;;  %v1376_v0 = vld [vmem:[%s2376_s10 + $0x10] sm:$0xff] }
 0x697   : > { %1781 = vmatpush3.msra.mxu1 %v1376_v0 }
 0x698   : > { %v1347_v44 = vsel %vm466_vm0, %v2233_v43, 0.0  ;;  %1782 = vmatprep.subr.mxu1 %v1963_v8 }
 0x699   : > { %1348 = vadd.xlane.f32.xlu1 %v1347_v44  ;;  %1783 = vmatpush3.msra.mxu1 %v1375_v51 }
 0x69a   : > { %1784 = vmatprep.subr.mxu1 %v1963_v8 }
 0x69b   : > { %1785 = vmatpush3.msra.mxu1 %v1374_v52 }
 0x722   : > { %v1349_v45 = vpop.xlane.xlu1 %1348 }
 0x723   : > { %v1350_v46 = vmul.f32 0.03125, %v1349_v45 }
 0x725   : > { %v1351_v47 = vsub.f32 %v2233_v43, %v1350_v46 }
 0x727   : > { %v1352_v48 = vmul.f32 %v1351_v47, %v1351_v47 }
 0x729   : > { %v1353_v49 = vsel %vm466_vm0, %v1352_v48, 0.0 }
 0x72a   : > { %1354 = vadd.xlane.f32.xlu0 %v1353_v49 }
 0x7b3   : > { %v1355_v53 = vpop.xlane.xlu0 %1354 }
 0x7b4   : > { %v1356_v54 = vmul.f32 0.03125, %v1355_v53 }
 0x7b6   : > { %v1357_v55 = vadd.f32 1e-05, %v1356_v54 }
 0x7b8   : > { %1897 = vrsqrt.f32 %v1357_v55 }
 0x7c5   : > { %v1898_v56 = vpop.eup %1897 }
 0x7c6   : > { %v1359_v58 = vmul.f32 %v1898_v56, %v1351_v47 }
 0x7c8   : > { %v1366_v60 = vmul.f32 %v1659_v57, %v1359_v58 }
 0x7ca   : > { %v1373_v61 = vadd.f32 %v1660_v59, %v1366_v60 }
 0x7cc   : > { %1787 = vmatmul.mubr.msk.f32.vlgmr.msra.gmra.mxu1 %vm466_vm0, %v1373_v61 }
 0x88c   : > { %v1454_v17 = vpop.f32.mrf.mxu1 }
 0x88d   : > { %v1455_v18 = vadd.f32 %v1661_v16, %v1454_v17 }
 0x88e   : > { %v1788_v19 = vpop.f32.mrf.mxu1 }
 0x88f   : > { %v1458_v20 = vmul.f32 %v1455_v18, %v1455_v18  ;;  %v1460_v26 = vmul.f32 0.5, %v1455_v18 }
 0x891   : > { %v1459_v21 = vmul.f32 %v1458_v20, %v1455_v18 }
 0x893   : > { %v1461_v22 = vmul.f32 0.044715, %v1459_v21 }
 0x895   : > { %v1462_v23 = vadd.f32 %v1461_v22, %v1455_v18 }
 0x897   : > { %v1463_v24 = vmul.f32 0.7978846, %v1462_v23 }
 0x899   : > { %1899 = vtanh.f32 %v1463_v24 }
 0x8a6   : > { %v1900_v25 = vpop.eup %1899 }
 0x8a7   : > { %v1465_v27 = vadd.f32 1.0, %v1900_v25 }
 0x8a9   : > { %v1466_v8 = vmul.f32 %v1465_v27, %v1460_v26 }
 0x8ab   : > { %1822 = vmatmul.mubr.f32.vlgmr.msra.gmra.mxu0 %v1466_v8 }
 0x96b   : > { %v1556_v29 = vpop.f32.mrf.mxu0 }
 0x96c   : > { %v1557_v30 = vadd.f32 %v1663_v28, %v1556_v29 }
 0x96d   : > { %v1823_v31 = vpop.f32.mrf.mxu0 }
 0x96e   : > { %v1560_v32 = vadd.f32 %v1557_v30, %v2233_v43 }
 0x970   : > { %1561 = vst.msk [vmem:[%s458_s21] sm:$0xff] %vm466_vm0, %v1560_v32 }
 0x971   : > { %1914 = shalt.err (!%p1911_p3)
}
 0x972   : > { %s1915_s1 = scalar_lea.hbm %s1574_s2, 128  ;;  %s1919_s20 = scalar_lea.hbm %s2380_s14, 256 }
 0x973   : > { %p1916_p4 = scmp.ne.s32.totalorder %s1574_s2, %s1915_s1  ;;  %p1920_p9 = scmp.lt.s32.totalorder %s1574_s2, %s2380_s14 }
 0x974   : > { %p1921_p10 = scmp.lt.s32.totalorder %s1919_s20, %s1915_s1 }
 0x975   : > { %p1917_p7 = pnand %p1916_p4, %p2093_p5 }
 0x976   : > { %p1922_p11 = por %p1921_p10, %p1920_p9 }
 0x977   : > { %p1918_p8 = pneg %p1917_p7 }
 0x979   : > { %p1923_p12 = pnand %p1922_p11, %p1918_p8 }
 0x97b   : > { %1926 = shalt.err (!%p1923_p12)
}
 0x97c   : > { %1824 = dma.vmem_to_hbm [thread:$0]  (%p2093_p5), %s1577_s0, 128, %s1574_s2, %s1563_s3  }
 0x97d PF: > { %p1830_p13 = scmp.ge.s32.totalorder %s1961_s16, 2  ;;  %s1588_s4 = sand.u32 1, %s1949_s29  }
 0x97e   : > { %s1589_s17 = scalar_lea.sflag [#allocation4], %s1588_s4 }
 0x97f   : > { %p1827_p0 = pnand %p1830_p13, %p2097_p6 }
 0x981   : > { %p1828_p1 = pneg %p1827_p0 }
 0x983   : > { %1944 = dma.done.wait (%p1828_p1), %s1589_s17, 128  }
 0x984   : > { %1946 = vsyncadd (%p1828_p1), %s1589_s17, 4294967168  ;;  %p24_p2 = scmp.ge.s32.totalorder %s2080_s19, 4   ;;  %s2393_s29 = smov %s1953_s30 }
 0x985   : > { %s2394_s30 = smov %s1957_s15  ;;  %s2395_s15 = smov %s2091_s22 }
 0x986   : > { %s2396_s16 = smov %s2080_s19  ;;  %26 = sbr.rel (!%p24_p2) target bundleno = 9 (0x9), region = 111 }
 0x98b   :  { %1594 = vsyncpa [#allocation4], 1 }
 0x98c   :  { %1596 = vsyncpa [#allocation4 + $0x1], 1 }

</bundles_post_ra>
